<compile_context>
chip_gen: v6e
topology: v6e:2x2x1
jax: 0.10.0
libtpu: 0.0.40
codegen_flags: <defaults>
</compile_context>

<pallas_src>
import numpy as np
import jax
import jax.numpy as jnp
from jax.experimental import pallas as pl
from jax.experimental.pallas import tpu as pltpu


# ---------------------------------------------------------------------------
# Model hyper-parameters (match the nn.Module constructor args)
# ---------------------------------------------------------------------------
DIM = 16
KERNEL_SIZE = 4
STRIDE = 2
# actf = "ReLU"; weight_norm = False -> plain nn.Linear head
# TODO(synk): generic `actf` (getattr(nn, actf)) and WeightNormedLinear are only
#             implemented for ReLU / plain Linear.


def _dim_change(dim_in, kernel_size, stride, padding=0, dilation=1):
    dividend = dim_in + 2 * padding - dilation * (kernel_size - 1) - 1
    return int(dividend / stride + 1)


def build_layer_config(dim, kernel_size, stride):
    """Replicates the while-loop in CouplingSqueezingCNN.__init__.

    Returns list of (c_in, c_out, l_in, l_out) per conv layer, plus final (channels, length).
    """
    layers = []
    channels = 1
    dimension = dim
    while _dim_change(dimension, kernel_size, stride) > 0:
        l_out = _dim_change(dimension, kernel_size, stride)
        layers.append((channels, channels * stride, dimension, l_out))
        channels *= stride
        dimension = l_out
    return layers, channels, dimension


def _round_up(x, m):
    return ((x + m - 1) // m) * m


def _conv_band_block(w, b, c_in, c_out, l_in, l_out, k, stride, pad_in, pad_out):
    """Fold one Conv1d into a banded matmul on a length-major slab (single group).

    Returns W (pad_in, pad_out) and bias (pad_out,), length-major output index
    t*c_out + c; padded rows/cols are exact zeros.
    """
    w_np = np.asarray(jax.device_get(w), dtype=np.float32)   # (c_out, c_in, k) torch layout
    b_np = np.asarray(jax.device_get(b), dtype=np.float32)   # (c_out,)
    # rows ordered (time-offset, c_in) to match the length-major receptive field
    w2d = np.transpose(w_np, (2, 1, 0)).reshape(k * c_in, c_out)
    W = np.zeros((pad_in, pad_out), dtype=np.float32)
    for t in range(l_out):
        W[t * stride * c_in:(t * stride + k) * c_in,
          t * c_out:(t + 1) * c_out] = w2d
    bias = np.zeros((pad_out,), dtype=np.float32)
    bias[:l_out * c_out] = np.tile(b_np, l_out)
    return W, bias


def pack_params(conv_ws, conv_bs, lin_w, lin_b, layer_cfg, final_c, final_l,
                kernel_size, stride, g):
    """Build g-way block-diagonal banded conv weights + permuted linear head."""
    params = []
    # input slab width per group = dim (layer 0: c_in=1, l_in=dim)
    cur_in_pad = layer_cfg[0][0] * layer_cfg[0][2]
    for (c_in, c_out, l_in, l_out), w, b in zip(layer_cfg, conv_ws, conv_bs):
        out_real = l_out * c_out
        out_pad = _round_up(out_real, 8)          # 14 -> 16 : clean lane tiling
        Wb, bb = _conv_band_block(w, b, c_in, c_out, l_in, l_out,
                                  kernel_size, stride, cur_in_pad, out_pad)
        params += [jnp.asarray(np.kron(np.eye(g, dtype=np.float32), Wb)),
                   jnp.asarray(np.tile(bb, g).reshape(1, -1))]
        cur_in_pad = out_pad

    # Linear head: torch flatten index is c*L + t (channel-major); our slab is
    # length-major (index t*C + c), so permute the weight rows accordingly.
    lw = np.asarray(jax.device_get(lin_w), dtype=np.float32)   # (out_dim, C*L)
    lb = np.asarray(jax.device_get(lin_b), dtype=np.float32)   # (out_dim,)
    out_dim = lw.shape[0]
    Wl = np.zeros((cur_in_pad, out_dim), dtype=np.float32)
    for t in range(final_l):
        for c in range(final_c):
            Wl[t * final_c + c, :] = lw[:, c * final_l + t]
    params += [jnp.asarray(np.kron(np.eye(g, dtype=np.float32), Wl)),
               jnp.asarray(np.tile(lb, g).reshape(1, -1))]
    return params


# ---------------------------------------------------------------------------
# Pallas kernel: 3 matmuls total (conv1, conv2, linear head), lane-dense slabs
# ---------------------------------------------------------------------------
def make_kernel(n_conv):
    def kernel(*refs):
        # refs = (x, W1, b1, ..., Wn, bn, W_lin, b_lin, out)
        x_ref = refs[0]
        o_ref = refs[-1]

        h = x_ref[...]                                   # (TILE, g*dim)
        for i in range(n_conv):
            w = refs[1 + 2 * i][...]                     # block-diag banded conv
            b = refs[2 + 2 * i][...]                     # (1, g*out_pad)
            h = jnp.maximum(
                jnp.dot(h, w, preferred_element_type=jnp.float32) + b, 0.0)  # ReLU

        w_lin = refs[1 + 2 * n_conv][...]                # (g*flat, g*2*dim)
        b_lin = refs[2 + 2 * n_conv][...]                # (1, g*2*dim)
        o_ref[...] = (jnp.dot(h, w_lin, preferred_element_type=jnp.float32)
                      + b_lin).astype(o_ref.dtype)

    return kernel


def coupling_squeezing_cnn_forward(x, conv_ws, conv_bs, lin_w, lin_b,
                                   layer_cfg, final_c, final_l,
                                   kernel_size=KERNEL_SIZE, stride=STRIDE,
                                   group=8, tile_rows=4096):
    """x: (B, DIM) float32. Returns (B, 2*DIM) float32.

    group    : batch rows packed into the lane dimension (g=8 -> 128-lane slabs)
    tile_rows: packed rows per grid step (4096 packed == 32768 original rows)
    """
    B, in_dim = x.shape
    out_dim = lin_w.shape[0]
    n_conv = len(layer_cfg)
    g = int(group)

    # ---- glue: block-diagonal banded conv mats + permuted/tiled linear head ----
    params = pack_params(conv_ws, conv_bs, lin_w, lin_b, layer_cfg,
                         final_c, final_l, kernel_size, stride, g)

    # ---- pack g batch rows into the lane dimension (free row-major reshape) ----
    B_pad = _round_up(B, g * 8)           # packed row count is a multiple of 8
    if B_pad != B:
        x = jnp.concatenate(
            [x, jnp.zeros((B_pad - B, in_dim), dtype=x.dtype)], axis=0)
    Bp = B_pad // g
    xp = x.reshape(Bp, g * in_dim)

    # ---- batch tiling in packed rows ----
    TILE = min(int(tile_rows), Bp)
    # keep the grid at >= ~4 steps so both v7x TensorCores stay fed
    TILE = min(TILE, _round_up(pl.cdiv(Bp, 4), 8))
    TILE = max(8, _round_up(TILE, 8))
    grid = (pl.cdiv(Bp, TILE),)

    in_specs = [pl.BlockSpec((TILE, g * in_dim), lambda i: (i, 0))]
    for p in params:
        # full array as the block, constant index -> weights stay resident in VMEM
        in_specs.append(pl.BlockSpec(p.shape, lambda i: (0, 0)))
    out_specs = pl.BlockSpec((TILE, g * out_dim), lambda i: (i, 0))

    weight_bytes = sum(int(np.prod(p.shape)) * p.dtype.itemsize for p in params)
    flops = 2 * Bp * sum(int(p.shape[0]) * int(p.shape[1]) for p in params[0::2])
    cost = pl.CostEstimate(
        flops=flops,
        transcendentals=0,
        bytes_accessed=B_pad * (in_dim + out_dim) * 4 + weight_bytes)

    out_p = pl.pallas_call(
        make_kernel(n_conv),
        out_shape=jax.ShapeDtypeStruct((Bp, g * out_dim), jnp.float32),
        grid=grid,
        in_specs=in_specs,
        out_specs=out_specs,
        compiler_params=pltpu.CompilerParams(
            dimension_semantics=("parallel",),          # megacore sharding on v7x
            vmem_limit_bytes=32 * 1024 * 1024),         # safe on v7x's 64 MiB VMEM
        cost_estimate=cost,
    )(xp, *params)

    # un-pack lanes back to rows and drop batch padding
    return out_p.reshape(B_pad, out_dim)[:B]


# ---------------------------------------------------------------------------
# Pure-JAX reference (mirrors the PyTorch forward exactly)
# ---------------------------------------------------------------------------
def reference_forward(x, conv_ws, conv_bs, lin_w, lin_b, stride=STRIDE):
    h = x[:, None, :]  # (B, 1, L) == torch NCL
    for w, b in zip(conv_ws, conv_bs):
        h = jax.lax.conv_general_dilated(
            h, w, window_strides=(stride,), padding="VALID",
            dimension_numbers=("NCH", "OIH", "NCH"))
        h = jnp.maximum(h + b[None, :, None], 0.0)
    flat = h.reshape(h.shape[0], -1)        # channel-major, same as torch .view
    return flat @ lin_w.T + lin_b


# ---------------------------------------------------------------------------
if __name__ == "__main__":
    layer_cfg, final_c, final_l = build_layer_config(DIM, KERNEL_SIZE, STRIDE)

    key = jax.random.PRNGKey(0)
    keys = jax.random.split(key, 2 * len(layer_cfg) + 4)

    # deterministic synthetic parameters (shapes match the nn.Module)
    conv_ws, conv_bs = [], []
    for i, (c_in, c_out, _l_in, _l_out) in enumerate(layer_cfg):
        conv_ws.append(jax.random.normal(keys[2 * i], (c_out, c_in, KERNEL_SIZE),
                                         dtype=jnp.float32) * 0.3)
        conv_bs.append(jax.random.normal(keys[2 * i + 1], (c_out,),
                                         dtype=jnp.float32) * 0.1)
    lin_w = jax.random.normal(keys[-4], (2 * DIM, final_c * final_l),
                              dtype=jnp.float32) * 0.2
    lin_b = jax.random.normal(keys[-3], (2 * DIM,), dtype=jnp.float32) * 0.1

    # ---- small test: batch=2, dim=16 (exercises batch padding + lane packing) ----
    x = jax.random.normal(keys[-2], (2, DIM), dtype=jnp.float32)
    out = jax.block_until_ready(coupling_squeezing_cnn_forward(
        x, conv_ws, conv_bs, lin_w, lin_b, layer_cfg, final_c, final_l))
    ref = jax.block_until_ready(reference_forward(x, conv_ws, conv_bs, lin_w, lin_b))
    assert out.shape == (2, 2 * DIM), out.shape
    np.testing.assert_allclose(np.asarray(out), np.asarray(ref), rtol=1e-5, atol=1e-5)

    # ---- multi-grid-step test: batch=100 with a small packed-row tile ----
    x2 = jax.random.normal(keys[-1], (100, DIM), dtype=jnp.float32)
    out2 = jax.block_until_ready(coupling_squeezing_cnn_forward(
        x2, conv_ws, conv_bs, lin_w, lin_b, layer_cfg, final_c, final_l,
        tile_rows=8))
    ref2 = jax.block_until_ready(reference_forward(x2, conv_ws, conv_bs, lin_w, lin_b))
    np.testing.assert_allclose(np.asarray(out2), np.asarray(ref2), rtol=1e-5, atol=1e-5)

    print("KERNEL_OK")
</pallas_src>

<mosaic_0001>
module attributes {stable_mosaic.version = 11 : i64} {
  func.func @kernel(%arg0: i32, %arg1: memref<8x128xf32, #tpu.memory_space<vmem>>, %arg2: memref<128x128xf32, #tpu.memory_space<vmem>>, %arg3: memref<1x128xf32, #tpu.memory_space<vmem>>, %arg4: memref<128x64xf32, #tpu.memory_space<vmem>>, %arg5: memref<1x64xf32, #tpu.memory_space<vmem>>, %arg6: memref<64x256xf32, #tpu.memory_space<vmem>>, %arg7: memref<1x256xf32, #tpu.memory_space<vmem>>, %arg8: memref<8x256xf32, #tpu.memory_space<vmem>>) attributes {dimension_semantics = [#tpu.dimension_semantics<parallel>], iteration_bounds = array<i64: 1>, scalar_prefetch = 0 : i64, scratch_operands = 0 : i64, tpu.core_type = #tpu.core_type<tc>, window_params = [{transform_indices = @transform_0, window_bounds = array<i64: 8, 128>}, {pipeline_mode = #tpu.pipeline_mode<synchronous>, transform_indices = @transform_1, window_bounds = array<i64: 128, 128>}, {pipeline_mode = #tpu.pipeline_mode<synchronous>, transform_indices = @transform_2, window_bounds = array<i64: 1, 128>}, {pipeline_mode = #tpu.pipeline_mode<synchronous>, transform_indices = @transform_3, window_bounds = array<i64: 128, 64>}, {pipeline_mode = #tpu.pipeline_mode<synchronous>, transform_indices = @transform_4, window_bounds = array<i64: 1, 64>}, {pipeline_mode = #tpu.pipeline_mode<synchronous>, transform_indices = @transform_5, window_bounds = array<i64: 64, 256>}, {pipeline_mode = #tpu.pipeline_mode<synchronous>, transform_indices = @transform_6, window_bounds = array<i64: 1, 256>}, {transform_indices = @transform_7, window_bounds = array<i64: 8, 256>}]} {
    %c0 = arith.constant 0 : index
    %c0_0 = arith.constant 0 : index
    %0 = vector.load %arg1[%c0, %c0_0] : memref<8x128xf32, #tpu.memory_space<vmem>>, vector<8x128xf32>
    %c0_1 = arith.constant 0 : index
    %c0_2 = arith.constant 0 : index
    %1 = vector.load %arg2[%c0_1, %c0_2] : memref<128x128xf32, #tpu.memory_space<vmem>>, vector<128x128xf32>
    %c0_3 = arith.constant 0 : index
    %c0_4 = arith.constant 0 : index
    %2 = vector.load %arg3[%c0_3, %c0_4] : memref<1x128xf32, #tpu.memory_space<vmem>>, vector<1x128xf32>
    %cst = arith.constant dense<0.000000e+00> : vector<8x128xf32>
    %3 = tpu.matmul %0, %1, %cst {dimension_numbers = #tpu.dot_dimension_numbers<[1], [0], [0], [1], [0, 0, 1, 1], [], []>} : vector<8x128xf32>, vector<128x128xf32>, vector<8x128xf32> -> vector<8x128xf32>
    %4 = vector.broadcast %2 : vector<1x128xf32> to vector<8x128xf32>
    %5 = arith.addf %3, %4 : vector<8x128xf32>
    %cst_5 = arith.constant 0.000000e+00 : f32
    %6 = vector.broadcast %cst_5 : f32 to vector<8x128xf32>
    %7 = arith.maximumf %5, %6 : vector<8x128xf32>
    %c0_6 = arith.constant 0 : index
    %c0_7 = arith.constant 0 : index
    %8 = vector.load %arg4[%c0_6, %c0_7] : memref<128x64xf32, #tpu.memory_space<vmem>>, vector<128x64xf32>
    %c0_8 = arith.constant 0 : index
    %c0_9 = arith.constant 0 : index
    %9 = vector.load %arg5[%c0_8, %c0_9] : memref<1x64xf32, #tpu.memory_space<vmem>>, vector<1x64xf32>
    %cst_10 = arith.constant dense<0.000000e+00> : vector<8x64xf32>
    %10 = tpu.matmul %7, %8, %cst_10 {dimension_numbers = #tpu.dot_dimension_numbers<[1], [0], [0], [1], [0, 0, 1, 1], [], []>} : vector<8x128xf32>, vector<128x64xf32>, vector<8x64xf32> -> vector<8x64xf32>
    %11 = vector.broadcast %9 : vector<1x64xf32> to vector<8x64xf32>
    %12 = arith.addf %10, %11 : vector<8x64xf32>
    %cst_11 = arith.constant 0.000000e+00 : f32
    %13 = vector.broadcast %cst_11 : f32 to vector<8x64xf32>
    %14 = arith.maximumf %12, %13 : vector<8x64xf32>
    %c0_12 = arith.constant 0 : index
    %c0_13 = arith.constant 0 : index
    %15 = vector.load %arg6[%c0_12, %c0_13] : memref<64x256xf32, #tpu.memory_space<vmem>>, vector<64x256xf32>
    %c0_14 = arith.constant 0 : index
    %c0_15 = arith.constant 0 : index
    %16 = vector.load %arg7[%c0_14, %c0_15] : memref<1x256xf32, #tpu.memory_space<vmem>>, vector<1x256xf32>
    %cst_16 = arith.constant dense<0.000000e+00> : vector<8x256xf32>
    %17 = tpu.matmul %14, %15, %cst_16 {dimension_numbers = #tpu.dot_dimension_numbers<[1], [0], [0], [1], [0, 0, 1, 1], [], []>} : vector<8x64xf32>, vector<64x256xf32>, vector<8x256xf32> -> vector<8x256xf32>
    %18 = vector.broadcast %16 : vector<1x256xf32> to vector<8x256xf32>
    %19 = arith.addf %17, %18 : vector<8x256xf32>
    %c0_17 = arith.constant 0 : index
    %c0_18 = arith.constant 0 : index
    %20 = vector.load %arg8[%c0_17, %c0_18] : memref<8x256xf32, #tpu.memory_space<vmem>>, vector<8x256xf32>
    tpu.vector_store %arg8[%c0_17, %c0_18], %19 {strides = array<i32>} : memref<8x256xf32, #tpu.memory_space<vmem>>, vector<8x256xf32>,
    return
  }
  func.func @transform_0(%arg0: i32) -> (i32, i32) {
    %c0_i32 = arith.constant 0 : i32
    %c0_i32_0 = arith.constant 0 : i32
    return %arg0, %c0_i32 : i32, i32
  }
  func.func @transform_1(%arg0: i32) -> (i32, i32) {
    %c0_i32 = arith.constant 0 : i32
    %c0_i32_0 = arith.constant 0 : i32
    %c0_i32_1 = arith.constant 0 : i32
    return %c0_i32, %c0_i32_0 : i32, i32
  }
  func.func @transform_2(%arg0: i32) -> (i32, i32) {
    %c0_i32 = arith.constant 0 : i32
    %c0_i32_0 = arith.constant 0 : i32
    %c0_i32_1 = arith.constant 0 : i32
    return %c0_i32, %c0_i32_0 : i32, i32
  }
  func.func @transform_3(%arg0: i32) -> (i32, i32) {
    %c0_i32 = arith.constant 0 : i32
    %c0_i32_0 = arith.constant 0 : i32
    %c0_i32_1 = arith.constant 0 : i32
    return %c0_i32, %c0_i32_0 : i32, i32
  }
  func.func @transform_4(%arg0: i32) -> (i32, i32) {
    %c0_i32 = arith.constant 0 : i32
    %c0_i32_0 = arith.constant 0 : i32
    %c0_i32_1 = arith.constant 0 : i32
    return %c0_i32, %c0_i32_0 : i32, i32
  }
  func.func @transform_5(%arg0: i32) -> (i32, i32) {
    %c0_i32 = arith.constant 0 : i32
    %c0_i32_0 = arith.constant 0 : i32
    %c0_i32_1 = arith.constant 0 : i32
    return %c0_i32, %c0_i32_0 : i32, i32
  }
  func.func @transform_6(%arg0: i32) -> (i32, i32) {
    %c0_i32 = arith.constant 0 : i32
    %c0_i32_0 = arith.constant 0 : i32
    %c0_i32_1 = arith.constant 0 : i32
    return %c0_i32, %c0_i32_0 : i32, i32
  }
  func.func @transform_7(%arg0: i32) -> (i32, i32) {
    %c0_i32 = arith.constant 0 : i32
    %c0_i32_0 = arith.constant 0 : i32
    return %arg0, %c0_i32 : i32, i32
  }
}

</mosaic_0001>

<bundles_post_ra>
// kernel: tpu_custom_call.1
= control target key start
LH: loop header
LB: loop body
LE: loop exit
PB: predicated region body
PF: predicated region fallthrough
CT: control target
= control target key end

     0   :  { %12 = vsyncpa [#allocation3], 0  ;;  %s702_s0 = inlined_call_operand.vmem [shape: f32[8,128], index: 0, kind: input, shape index: {}]   ;;  %s703_s1 = inlined_call_operand.vmem [shape: f32[128,128], index: 1, kind: input, shape index: {}]   ;;  %s704_s2 = inlined_call_operand.vmem [shape: f32[1,128], index: 2, kind: input, shape index: {}]   ;;  %s705_s3 = inlined_call_operand.vmem [shape: f32[128,64], index: 3, kind: input, shape index: {}]   ;;  %s706_s4 = inlined_call_operand.vmem [shape: f32[1,64], index: 4, kind: input, shape index: {}]   ;;  %s707_s5 = inlined_call_operand.hbm [shape: f32[64,256], index: 5, kind: input, shape index: {}]   ;;  %s708_s6 = inlined_call_operand.vmem [shape: f32[1,256], index: 6, kind: input, shape index: {}]   ;;  %s709_s7 = inlined_call_operand.hbm [shape: f32[8,256], index: 7, kind: output, shape index: {}]  }
   0x1   :  { %13 = vsyncpa [#allocation4], 0  ;;  %s507_s24 = smov [#allocation2]  }
   0x2   :  { %s29_s25 = sshll.u32 %s507_s24, 4  ;;  %s30_s25 = int_to_ptr.vmem [resolvable:$true] %s29_s25 }
   0x3   :  { %s471_s26 = scalar_lea.vmem %s30_s25, 2048  ;;  %p476_p1 = scmp.lt.s32.totalorder %s30_s25, %s30_s25 }
   0x4   :  { %p472_p0 = scmp.ne.s32.totalorder %s30_s25, %s471_s26  ;;  %p477_p2 = scmp.lt.s32.totalorder %s471_s26, %s471_s26 }
   0x6   :  { %p478_p3 = por %p477_p2, %p476_p1 }
   0x8   :  { %p479_p4 = pnand %p478_p3, %p472_p0 }
   0xa   :  { %482 = shalt.err (!%p479_p4)
}
   0xb   :  { %s508_s27 = smov 256   ;;  %s509_s28 = smov 16  }
   0xc   :  { %35 = dma.hbm_to_vmem [thread:$0]  %s707_s5, 2048, %s30_s25, [#allocation3], %s508_s27, %s508_s27, %s509_s28  }
   0xd   :  { %503 = dma.done.wait [#allocation3], 2048  }
   0xe   :  { %504 = vsyncadd [#allocation3], 4294965248  ;;  %v510_v0 = vmov 0.0   ;;  %vm511_vm0 = vmmov 0   ;;  %v57_v1 = vld [vmem:[%s703_s1 + $0x78] sm:$0xff]  ;;  %v56_v2 = vld [vmem:[%s703_s1 + $0x70] sm:$0xff]  ;;  %v248_v60 = vlaneseq }
   0xf   :  { %387 = vmatprep.subr.mxu0 %v510_v0  ;;  %419 = vmatprep.mubr.msk.f32.mxu0 %vm511_vm0, %v510_v0  ;;  %v55_v3 = vld [vmem:[%s703_s1 + $0x68] sm:$0xff]  ;;  %v54_v4 = vld [vmem:[%s703_s1 + $0x60] sm:$0xff]  ;;  %v151_v5 = vld [vmem:[%s705_s3 + $0x78] sm:$0xff]  ;;  %vm258_vm1 = vcmask 523264   ;;  %s512_s27 = smov [#allocation5]  }
  0x10   :  { %422 = vmatprep.subr.mxu1 %v510_v0  ;;  %454 = vmatprep.mubr.msk.f32.mxu1 %vm511_vm0, %v510_v0  ;;  %v53_v6 = vld [vmem:[%s703_s1 + $0x58] sm:$0xff]  ;;  %v150_v7 = vld [vmem:[%s705_s3 + $0x70] sm:$0xff]  ;;  %v149_v8 = vld [vmem:[%s705_s3 + $0x68] sm:$0xff]  ;;  %v249_v61 = vshrl.u32 %v248_v60, 7  ;;  %s341_s28 = sshll.u32 %s512_s27, 4  ;;  %s342_s28 = int_to_ptr.vmem [resolvable:$true] %s341_s28 }
  0x11   :  { %388 = vmatpush3.msra.mxu0 %v57_v1  ;;  %423 = vmatpush3.msra.mxu1 %v151_v5  ;;  %v52_v9 = vld [vmem:[%s703_s1 + $0x50] sm:$0xff]  ;;  %v148_v10 = vld [vmem:[%s705_s3 + $0x60] sm:$0xff]  ;;  %v51_v11 = vld [vmem:[%s703_s1 + $0x48] sm:$0xff]  ;;  %p488_p6 = scmp.lt.s32.totalorder %s342_s28, %s342_s28 }
  0x12   :  { %389 = vmatprep.subr.mxu0 %v510_v0  ;;  %424 = vmatprep.subr.mxu1 %v510_v0  ;;  %v147_v12 = vld [vmem:[%s705_s3 + $0x58] sm:$0xff]  ;;  %v50_v13 = vld [vmem:[%s703_s1 + $0x40] sm:$0xff]  ;;  %v146_v14 = vld [vmem:[%s705_s3 + $0x50] sm:$0xff]  ;;  %v250_v62 = vsub.s32 0, %v249_v61 }
  0x13   :  { %390 = vmatpush3.msra.mxu0 %v56_v2  ;;  %425 = vmatpush3.msra.mxu1 %v150_v7  ;;  %v49_v15 = vld [vmem:[%s703_s1 + $0x38] sm:$0xff]  ;;  %v145_v16 = vld [vmem:[%s705_s3 + $0x48] sm:$0xff]  ;;  %v48_v17 = vld [vmem:[%s703_s1 + $0x30] sm:$0xff] }
  0x14   :  { %391 = vmatprep.subr.mxu0 %v510_v0  ;;  %426 = vmatprep.subr.mxu1 %v510_v0  ;;  %v144_v18 = vld [vmem:[%s705_s3 + $0x40] sm:$0xff]  ;;  %v47_v19 = vld [vmem:[%s703_s1 + $0x28] sm:$0xff]  ;;  %v143_v20 = vld [vmem:[%s705_s3 + $0x38] sm:$0xff] }
  0x15   :  { %392 = vmatpush3.msra.mxu0 %v55_v3  ;;  %427 = vmatpush3.msra.mxu1 %v149_v8  ;;  %v46_v21 = vld [vmem:[%s703_s1 + $0x20] sm:$0xff]  ;;  %v142_v22 = vld [vmem:[%s705_s3 + $0x30] sm:$0xff]  ;;  %v45_v23 = vld [vmem:[%s703_s1 + $0x18] sm:$0xff] }
  0x16   :  { %393 = vmatprep.subr.mxu0 %v510_v0  ;;  %428 = vmatprep.subr.mxu1 %v510_v0  ;;  %v141_v24 = vld [vmem:[%s705_s3 + $0x28] sm:$0xff]  ;;  %v44_v25 = vld [vmem:[%s703_s1 + $0x10] sm:$0xff]  ;;  %v140_v26 = vld [vmem:[%s705_s3 + $0x20] sm:$0xff] }
  0x17   :  { %394 = vmatpush3.msra.mxu0 %v54_v4  ;;  %429 = vmatpush3.msra.mxu1 %v148_v10  ;;  %v43_v27 = vld [vmem:[%s703_s1 + $0x8] sm:$0xff]  ;;  %v139_v28 = vld [vmem:[%s705_s3 + $0x18] sm:$0xff]  ;;  %v42_v29 = vld [vmem:[%s703_s1] sm:$0xff] }
  0x18   :  { %395 = vmatprep.subr.mxu0 %v510_v0  ;;  %430 = vmatprep.subr.mxu1 %v510_v0  ;;  %v41_v30 = vld [vmem:[%s702_s0] sm:$0xff]  ;;  %v138_v31 = vld [vmem:[%s705_s3 + $0x10] sm:$0xff]  ;;  %v137_v32 = vld [vmem:[%s705_s3 + $0x8] sm:$0xff] }
  0x19   :  { %396 = vmatpush3.msra.mxu0 %v53_v6  ;;  %431 = vmatpush3.msra.mxu1 %v147_v12  ;;  %v136_v33 = vld [vmem:[%s705_s3] sm:$0xff]  ;;  %v245_v34 = vld [vmem:[#allocation2 + $0x78] sm:$0xff]  ;;  %v244_v35 = vld [vmem:[#allocation2 + $0x70] sm:$0xff] }
  0x1a   :  { %397 = vmatprep.subr.mxu0 %v510_v0  ;;  %432 = vmatprep.subr.mxu1 %v510_v0  ;;  %v243_v36 = vld [vmem:[#allocation2 + $0x68] sm:$0xff]  ;;  %v242_v37 = vld [vmem:[#allocation2 + $0x60] sm:$0xff]  ;;  %v241_v38 = vld [vmem:[#allocation2 + $0x58] sm:$0xff] }
  0x1b   :  { %398 = vmatpush3.msra.mxu0 %v52_v9  ;;  %433 = vmatpush3.msra.mxu1 %v146_v14  ;;  %v240_v39 = vld [vmem:[#allocation2 + $0x50] sm:$0xff]  ;;  %v239_v40 = vld [vmem:[#allocation2 + $0x48] sm:$0xff]  ;;  %v238_v41 = vld [vmem:[#allocation2 + $0x40] sm:$0xff] }
  0x1c   :  { %399 = vmatprep.subr.mxu0 %v510_v0  ;;  %434 = vmatprep.subr.mxu1 %v510_v0  ;;  %v237_v42 = vld [vmem:[#allocation2 + $0x38] sm:$0xff]  ;;  %v236_v43 = vld [vmem:[#allocation2 + $0x30] sm:$0xff]  ;;  %v235_v44 = vld [vmem:[#allocation2 + $0x28] sm:$0xff] }
  0x1d   :  { %400 = vmatpush3.msra.mxu0 %v51_v11  ;;  %435 = vmatpush3.msra.mxu1 %v145_v16  ;;  %v350_v45 = vld [vmem:[%s704_s2] ss:$0 sm:$0xff]  ;;  %v233_v51 = vld [vmem:[#allocation2 + $0x18] sm:$0xff]  ;;  %v232_v52 = vld [vmem:[#allocation2 + $0x10] sm:$0xff] }
  0x1e   :  { %401 = vmatprep.subr.mxu0 %v510_v0  ;;  %436 = vmatprep.subr.mxu1 %v510_v0  ;;  %v234_v50 = vld [vmem:[#allocation2 + $0x20] sm:$0xff]  ;;  %v231_v53 = vld [vmem:[#allocation2 + $0x8] sm:$0xff] }
  0x1f   :  { %402 = vmatpush3.msra.mxu0 %v50_v13  ;;  %437 = vmatpush3.msra.mxu1 %v144_v18  ;;  %v230_v54 = vld [vmem:[#allocation2] sm:$0xff] }
  0x20   :  { %403 = vmatprep.subr.mxu0 %v510_v0  ;;  %438 = vmatprep.subr.mxu1 %v510_v0  ;;  %v351_v55 = vld [vmem:[%s706_s4] ss:$0 sm:$0xff]  ;;  %s483_s4 = scalar_lea.vmem %s342_s28, 256 }
  0x21   :  { %404 = vmatpush3.msra.mxu0 %v49_v15  ;;  %439 = vmatpush3.msra.mxu1 %v143_v20  ;;  %v246_v63 = vld [vmem:[%s708_s6] sm:$0x3]  ;;  %p484_p5 = scmp.ne.s32.totalorder %s342_s28, %s483_s4  ;;  %p489_p7 = scmp.lt.s32.totalorder %s483_s4, %s483_s4 }
  0x22   :  { %405 = vmatprep.subr.mxu0 %v510_v0  ;;  %440 = vmatprep.subr.mxu1 %v510_v0  ;;  %v251_v1 = vrot.slane %v246_v63, %v250_v62 }
  0x23   :  { %406 = vmatpush3.msra.mxu0 %v48_v17  ;;  %441 = vmatpush3.msra.mxu1 %v142_v22  ;;  %p490_p8 = por %p489_p7, %p488_p6 }
  0x24   :  { %407 = vmatprep.subr.mxu0 %v510_v0  ;;  %442 = vmatprep.subr.mxu1 %v510_v0 }
  0x25   :  { %408 = vmatpush3.msra.mxu0 %v47_v19  ;;  %443 = vmatpush3.msra.mxu1 %v141_v24  ;;  %p491_p9 = pnand %p490_p8, %p484_p5 }
  0x26   :  { %409 = vmatprep.subr.mxu0 %v510_v0  ;;  %444 = vmatprep.subr.mxu1 %v510_v0 }
  0x27   :  { %410 = vmatpush3.msra.mxu0 %v46_v21  ;;  %445 = vmatpush3.msra.mxu1 %v140_v26 }
  0x28   :  { %411 = vmatprep.subr.mxu0 %v510_v0  ;;  %446 = vmatprep.subr.mxu1 %v510_v0 }
  0x29   :  { %412 = vmatpush3.msra.mxu0 %v45_v23  ;;  %447 = vmatpush3.msra.mxu1 %v139_v28 }
  0x2a   :  { %413 = vmatprep.subr.mxu0 %v510_v0  ;;  %448 = vmatprep.subr.mxu1 %v510_v0 }
  0x2b   :  { %414 = vmatpush3.msra.mxu0 %v44_v25  ;;  %449 = vmatpush3.msra.mxu1 %v138_v31 }
  0x2c   :  { %415 = vmatprep.subr.mxu0 %v510_v0  ;;  %450 = vmatprep.subr.mxu1 %v510_v0 }
  0x2d   :  { %416 = vmatpush3.msra.mxu0 %v43_v27  ;;  %451 = vmatpush3.msra.mxu1 %v137_v32 }
  0x2e   :  { %417 = vmatprep.subr.mxu0 %v510_v0  ;;  %452 = vmatprep.subr.mxu1 %v510_v0 }
  0x2f   :  { %418 = vmatpush3.msra.mxu0 %v42_v29  ;;  %453 = vmatpush3.msra.mxu1 %v136_v33 }
  0x30   :  { %420 = vmatmul.mubr.f32.vlgmr.msra.gmra.mxu0 %v41_v30  ;;  %278 = vmatprep.subr.mxu0 %v245_v34 }
  0x31   :  { %326 = vmatprep.mubr.f32.mxu0 %v510_v0  ;;  %279 = vmatpush1.msra.mxu0 %v244_v35  ;;  %v254_v0 = vsub.s32 1, %v249_v61 }
  0x32   :  { %280 = vmatprep.subr.mxu0 %v243_v36 }
  0x33   :  { %281 = vmatpush1.msra.mxu0 %v242_v37  ;;  %v255_v2 = vrot.slane %v246_v63, %v254_v0 }
  0x34   :  { %282 = vmatprep.subr.mxu0 %v241_v38 }
  0x35   :  { %283 = vmatpush1.msra.mxu0 %v240_v39 }
  0x36   :  { %284 = vmatprep.subr.mxu0 %v239_v40 }
  0x37   :  { %285 = vmatpush1.msra.mxu0 %v238_v41 }
  0x38   :  { %286 = vmatprep.subr.mxu0 %v237_v42 }
  0x39   :  { %287 = vmatpush1.msra.mxu0 %v236_v43 }
  0x3a   :  { %288 = vmatprep.subr.mxu0 %v235_v44 }
  0x3b   :  { %289 = vmatpush1.msra.mxu0 %v234_v50 }
  0x3c   :  { %290 = vmatprep.subr.mxu0 %v233_v51 }
  0x3d   :  { %291 = vmatpush1.msra.mxu0 %v232_v52 }
  0x3e   :  { %292 = vmatprep.subr.mxu0 %v231_v53 }
  0x3f   :  { %293 = vmatpush1.msra.mxu0 %v230_v54 }
  0xf0   :  { %v131_v46 = vpop.f32.mrf.mxu0 }
  0xf1   :  { %v132_v47 = vadd.f32 %v350_v45, %v131_v46 }
  0xf2   :  { %v421_v48 = vpop.f32.mrf.mxu0 }
  0xf3   :  { %v135_v49 = vmax.f32 %v132_v47, 0.0 }
  0xf5   :  { %455 = vmatmul.mubr.f32.vlgmr.msra.gmra.mxu1 %v135_v49 }
 0x1b5   :  { %v225_v56 = vpop.f32.mrf.mxu1 }
 0x1b6   :  { %v226_v57 = vadd.f32 %v351_v55, %v225_v56 }
 0x1b7   :  { %v456_v58 = vpop.f32.mrf.mxu1 }
 0x1b8   :  { %v229_v59 = vmax.f32 %v226_v57, 0.0 }
 0x1ba   :  { %352 = vmatmul.mubr.msk.f32.vlgmr.msra.gmra.mxu0 %vm258_vm1, %v229_v59 }
 0x27a   :  { %v328_v3 = vpop.f32.mrf.mxu0 }
 0x27b   :  { %v329_v4 = vadd.f32 %v328_v3, %v251_v1 }
 0x27c   :  { %v330_v5 = vpop.f32.mrf.mxu0 }
 0x27d   :  { %333 = vst [vmem:[#allocation5] sm:$0xff] %v329_v4  ;;  %v331_v6 = vadd.f32 %v330_v5, %v255_v2 }
 0x27f   :  { %334 = vst [vmem:[#allocation5 + $0x8] sm:$0xff] %v331_v6 }
 0x280   :  { %494 = shalt.err (!%p491_p9)
}
 0x281   :  { %344 = dma.vmem_to_hbm [thread:$0]  %s342_s28, 256, %s709_s7, [#allocation4]  }
 0x282   :  { %505 = dma.done.wait [#allocation4], 256  }
 0x283   :  { %506 = vsyncadd [#allocation4], 4294967040 }
 0x284   :  { %348 = vsyncpa [#allocation3], 1 }
 0x285   :  { %349 = vsyncpa [#allocation4], 1 }

</bundles_post_ra>
